<compile_context>
chip_gen: v6e
topology: v6e:2x2x1
jax: 0.10.0
libtpu: 0.0.40
codegen_flags: <defaults>
</compile_context>

<pallas_src>
from functools import partial

import jax
import jax.numpy as jnp
from jax.experimental import pallas as pl
from jax.experimental.pallas import tpu as pltpu


def _adaptive_loss_kernel(ratio_ref, logits_ref, target_ref, out_ref, *,
                          budget, conf_thresh, over_weight, under_weight,
                          batch, block_b, mask_rows):
    flops_ratio = ratio_ref[...].astype(jnp.float32)       # (TB, 1)
    logits = logits_ref[...].astype(jnp.float32)            # (TB, C)
    tgt = target_ref[...]                                    # (TB, 1) int32

    tb, C = logits.shape

    # ---- numerically-stable softmax statistics ------------------------------
    max_logit = jnp.max(logits, axis=1, keepdims=True)       # (TB, 1)
    exps = jnp.exp(logits - max_logit)                       # (TB, C); <= 1 everywhere
    denom = jnp.sum(exps, axis=1, keepdims=True)             # (TB, 1)
    inv_denom = pl.reciprocal(denom)                         # exact (feeds threshold cmp)
    prob_max = inv_denom                                     # exp(0) == 1 -> max prob = 1/denom

    class_ids = jax.lax.broadcasted_iota(jnp.int32, (tb, C), 1)
    # target confidence without materializing a one-hot buffer
    target_conf = jnp.sum(jnp.where(class_ids == tgt, exps, 0.0),
                          axis=1, keepdims=True) * inv_denom  # (TB, 1)

    # first-index argmax (matches torch/jnp tie-break); exps == 1.0 exactly at max lanes
    argmax_idx = jnp.min(jnp.where(exps >= 1.0, class_ids, C),
                         axis=1, keepdims=True)               # (TB, 1)
    correctness = (argmax_idx == tgt).astype(jnp.float32)     # (TB, 1)

    conf_dist = prob_max - target_conf                        # (TB, 1)

    # ---- over-computing loss (t='mul') ---------------------------------------
    over_sel = ((flops_ratio > budget).astype(jnp.float32)
                * correctness * prob_max) > conf_thresh
    over_t = ((flops_ratio - budget) * (prob_max - conf_thresh)
              * over_sel.astype(jnp.float32))                 # (TB, 1)

    # ---- under-computing loss (t='mul') --------------------------------------
    under_sel = ((flops_ratio < budget).astype(jnp.float32)
                 * (1.0 - correctness) * conf_dist) > conf_thresh
    under_t = ((budget - flops_ratio) * conf_dist
               * under_sel.astype(jnp.float32))               # (TB, 1)

    total = over_weight * over_t + under_weight * under_t     # (TB, 1)

    if mask_rows:
        # Partial trailing block: rows >= batch contain garbage (possibly NaN/Inf);
        # jnp.where selects, so none of it leaks into the partial sum.
        row = (pl.program_id(0) * block_b
               + jax.lax.broadcasted_iota(jnp.int32, (tb, 1), 0))
        total = jnp.where(row < batch, total, 0.0)

    out_ref[0] = jnp.sum(total, axis=0, keepdims=True)        # (1, 1) partial for this tile


def adaptive_loss(flops, flops_full, output, target, *, budget,
                  conf_thresh=0.8, over_weight=1.0, under_weight=1.0,
                  block_b=None):
    """flops/flops_full: (L, B) as in PyTorch; output: (B, C); target: (B,) int."""
    L, B = flops.shape
    assert flops_full.shape == (L, B)
    Bo, C = output.shape
    assert Bo == B

    elt = jnp.dtype(output.dtype).itemsize

    # Tiny wrapper-side glue (negligible vs the (B, C) logits read): per-sample
    # FLOPs ratio column and an int32 target column.
    flops_ratio = (jnp.sum(flops, axis=0).astype(jnp.float32)
                   / jnp.sum(flops_full, axis=0).astype(jnp.float32)).reshape(B, 1)
    target_2d = target.astype(jnp.int32).reshape(B, 1)

    # ---- tile sizing (per-generation VMEM aware, headroom for v7x) ----------
    try:
        vmem_cap = int(pltpu.get_tpu_info().vmem_capacity_bytes)
    except Exception:
        vmem_cap = 64 << 20                       # conservative fallback (v7x per-TC)

    vmem_budget = int(0.45 * vmem_cap)            # leave generous headroom
    # Live VMEM bytes per batch row:
    #   2x double-buffered logits input row (original dtype)
    #   ~4x (C,) f32 temporaries (f32 cast, exps, class iota, masked where)
    #   double-buffered ratio/target rows + slack
    per_row = 2 * C * elt + 4 * C * 4 + 32

    if B < 8:
        tb = B                                    # full-extent block, no (8,) constraint
    else:
        tb = (vmem_budget // max(per_row, 1)) // 8 * 8
        if block_b is not None:
            tb = min(tb, max(8, (int(block_b) // 8) * 8))
        tb = max(8, min(tb, (B // 8) * 8))        # block never exceeds the array extent
    num_tiles = pl.cdiv(B, tb)
    # Make sure the "parallel" batch axis can actually split across v7x's 2 TCs.
    if num_tiles == 1 and B >= 16:
        tb = max(8, ((B + 15) // 16) * 8)
        num_tiles = pl.cdiv(B, tb)
    mask_rows = (num_tiles * tb != B)

    kernel = partial(_adaptive_loss_kernel,
                     budget=float(budget),
                     conf_thresh=float(conf_thresh),
                     over_weight=float(over_weight),
                     under_weight=float(under_weight),
                     batch=B, block_b=tb, mask_rows=mask_rows)

    # Scoped-VMEM limit from the same per-row accounting (inputs + f32 temps),
    # capped with headroom off the physical capacity.
    needed = tb * per_row + (2 << 20)
    vmem_limit = int(min(max(needed, 16 << 20), int(0.75 * vmem_cap)))

    partials = pl.pallas_call(
        kernel,
        out_shape=jax.ShapeDtypeStruct((num_tiles, 1, 1), jnp.float32),
        grid=(num_tiles,),
        in_specs=[
            pl.BlockSpec((tb, 1), lambda i: (i, 0)),   # flops_ratio
            pl.BlockSpec((tb, C), lambda i: (i, 0)),   # logits (original dtype)
            pl.BlockSpec((tb, 1), lambda i: (i, 0)),   # target
        ],
        out_specs=pl.BlockSpec((1, 1, 1), lambda i: (i, 0, 0)),
        compiler_params=pltpu.CompilerParams(
            dimension_semantics=("parallel",),
            vmem_limit_bytes=vmem_limit,
        ),
    )(flops_ratio, output, target_2d)

    return jnp.sum(partials)


def adaptive_loss_ref(flops, flops_full, output, target, *, budget,
                      conf_thresh=0.8, over_weight=1.0, under_weight=1.0):
    """Pure-JAX reference mirroring the PyTorch forward."""
    flops_ratio = jnp.sum(flops, 0) / jnp.sum(flops_full, 0)
    probs = jax.nn.softmax(output.astype(jnp.float32), axis=1)
    prob_max = jnp.max(probs, axis=1)
    correctness = jnp.argmax(output, axis=1) == target
    target_conf = probs[jnp.arange(target.shape[0]), target]
    conf_dist = prob_max - target_conf
    over_sel = ((flops_ratio > budget) * correctness * prob_max) > conf_thresh
    over = jnp.sum((flops_ratio - budget) * (prob_max - conf_thresh) * over_sel)
    under_sel = ((flops_ratio < budget) * (~correctness) * conf_dist) > conf_thresh
    under = jnp.sum((budget - flops_ratio) * conf_dist * under_sel)
    return over * over_weight + under * under_weight


if __name__ == "__main__":
    key = jax.random.PRNGKey(0)

    # ---- Test 1: small shapes, single full-extent tile -----------------------
    L, B, C = 4, 8, 16
    budget, conf_thresh = 0.5, 0.3
    k1, k2, k3, k4 = jax.random.split(key, 4)
    flops = jax.random.uniform(k1, (L, B), jnp.float32, minval=0.1, maxval=1.0)
    flops_full = jax.random.uniform(k2, (L, B), jnp.float32, minval=0.8, maxval=1.2)
    output = 4.0 * jax.random.normal(k3, (B, C), jnp.float32)   # sharp softmax
    target = jax.random.randint(k4, (B,), 0, C, jnp.int32)

    loss = adaptive_loss(flops, flops_full, output, target,
                         budget=budget, conf_thresh=conf_thresh,
                         over_weight=1.0, under_weight=1.0)
    jax.block_until_ready(loss)
    ref = adaptive_loss_ref(flops, flops_full, output, target,
                            budget=budget, conf_thresh=conf_thresh,
                            over_weight=1.0, under_weight=1.0)
    assert jnp.allclose(loss, ref, rtol=1e-5, atol=1e-5), (loss, ref)

    # ---- Test 2: ragged batch (partial trailing block) + bf16 logits ---------
    L2, B2, C2 = 3, 50, 24
    k5, k6, k7, k8 = jax.random.split(jax.random.PRNGKey(1), 4)
    flops2 = jax.random.uniform(k5, (L2, B2), jnp.float32, minval=0.1, maxval=1.0)
    flops_full2 = jax.random.uniform(k6, (L2, B2), jnp.float32, minval=0.8, maxval=1.2)
    output2 = (4.0 * jax.random.normal(k7, (B2, C2), jnp.float32)).astype(jnp.bfloat16)
    target2 = jax.random.randint(k8, (B2,), 0, C2, jnp.int32)

    loss2 = adaptive_loss(flops2, flops_full2, output2, target2,
                          budget=0.6, conf_thresh=0.25,
                          over_weight=1.5, under_weight=0.7, block_b=16)
    jax.block_until_ready(loss2)
    ref2 = adaptive_loss_ref(flops2, flops_full2, output2, target2,
                             budget=0.6, conf_thresh=0.25,
                             over_weight=1.5, under_weight=0.7)
    assert jnp.allclose(loss2, ref2, rtol=1e-5, atol=1e-5), (loss2, ref2)

    # TODO(synk): the PyTorch module's unused t='add' branches and cd_thresh are not
    # exercised by forward() and are not implemented here.
    print("KERNEL_OK")
</pallas_src>

<mosaic_0001>
module attributes {stable_mosaic.version = 11 : i64} {
  func.func @_adaptive_loss_kernel(%arg0: i32, %arg1: memref<8x1xf32, #tpu.memory_space<vmem>>, %arg2: memref<8x16xf32, #tpu.memory_space<vmem>>, %arg3: memref<8x1xi32, #tpu.memory_space<vmem>>, %arg4: memref<1x1x1xf32, #tpu.memory_space<vmem>>) attributes {dimension_semantics = [#tpu.dimension_semantics<parallel>], iteration_bounds = array<i64: 1>, scalar_prefetch = 0 : i64, scratch_operands = 0 : i64, tpu.core_type = #tpu.core_type<tc>, window_params = [{transform_indices = @transform_0, window_bounds = array<i64: 8, 1>}, {transform_indices = @transform_1, window_bounds = array<i64: 8, 16>}, {transform_indices = @transform_2, window_bounds = array<i64: 8, 1>}, {transform_indices = @transform_3, window_bounds = array<i64: 1, 1, 1>}]} {
    %c0 = arith.constant 0 : index
    %c0_0 = arith.constant 0 : index
    %0 = vector.load %arg1[%c0, %c0_0] : memref<8x1xf32, #tpu.memory_space<vmem>>, vector<8x1xf32>
    %c0_1 = arith.constant 0 : index
    %c0_2 = arith.constant 0 : index
    %1 = vector.load %arg2[%c0_1, %c0_2] : memref<8x16xf32, #tpu.memory_space<vmem>>, vector<8x16xf32>
    %c0_3 = arith.constant 0 : index
    %c0_4 = arith.constant 0 : index
    %2 = vector.load %arg3[%c0_3, %c0_4] : memref<8x1xi32, #tpu.memory_space<vmem>>, vector<8x1xi32>
    %cst = arith.constant dense<0xFF800000> : vector<8xf32>
    %3 = vector.multi_reduction <maximumf>, %1, %cst [1] : vector<8x16xf32> to vector<8xf32>
    %4 = vector.shape_cast %3 : vector<8xf32> to vector<8x1xf32>
    %5 = vector.broadcast %4 : vector<8x1xf32> to vector<8x16xf32>
    %6 = arith.subf %1, %5 : vector<8x16xf32>
    %7 = math.exp %6 : vector<8x16xf32>
    %cst_5 = arith.constant dense<0.000000e+00> : vector<8xf32>
    %8 = vector.multi_reduction <add>, %7, %cst_5 [1] : vector<8x16xf32> to vector<8xf32>
    %9 = vector.shape_cast %8 : vector<8xf32> to vector<8x1xf32>
    %10 = tpu.reciprocal %9 : vector<8x1xf32> -> vector<8x1xf32>
    %11 = tpu.iota {dimensions = array<i32: 1>} : vector<8x16xi32>
    %12 = vector.broadcast %2 : vector<8x1xi32> to vector<8x16xi32>
    %13 = arith.cmpi eq, %11, %12 : vector<8x16xi32>
    %cst_6 = arith.constant 0.000000e+00 : f32
    %14 = vector.broadcast %cst_6 : f32 to vector<8x16xf32>
    %15 = arith.select %13, %7, %14 : vector<8x16xi1>, vector<8x16xf32>
    %cst_7 = arith.constant dense<0.000000e+00> : vector<8xf32>
    %16 = vector.multi_reduction <add>, %15, %cst_7 [1] : vector<8x16xf32> to vector<8xf32>
    %17 = vector.shape_cast %16 : vector<8xf32> to vector<8x1xf32>
    %18 = arith.mulf %17, %10 : vector<8x1xf32>
    %cst_8 = arith.constant 1.000000e+00 : f32
    %19 = vector.broadcast %cst_8 : f32 to vector<8x16xf32>
    %20 = arith.cmpf oge, %7, %19 : vector<8x16xf32>
    %c16_i32 = arith.constant 16 : i32
    %21 = vector.broadcast %c16_i32 : i32 to vector<8x16xi32>
    %22 = arith.select %20, %11, %21 : vector<8x16xi1>, vector<8x16xi32>
    %cst_9 = arith.constant dense<2147483647> : vector<8xi32>
    %23 = vector.multi_reduction <minsi>, %22, %cst_9 [1] : vector<8x16xi32> to vector<8xi32>
    %24 = vector.shape_cast %23 : vector<8xi32> to vector<8x1xi32>
    %25 = arith.cmpi eq, %24, %2 : vector<8x1xi32>
    %26 = arith.extui %25 : vector<8x1xi1> to vector<8x1xi32>
    %27 = arith.sitofp %26 : vector<8x1xi32> to vector<8x1xf32>
    %28 = arith.subf %10, %18 : vector<8x1xf32>
    %cst_10 = arith.constant 5.000000e-01 : f32
    %29 = vector.broadcast %cst_10 : f32 to vector<8x1xf32>
    %30 = arith.cmpf ogt, %0, %29 : vector<8x1xf32>
    %31 = arith.extui %30 : vector<8x1xi1> to vector<8x1xi32>
    %32 = arith.sitofp %31 : vector<8x1xi32> to vector<8x1xf32>
    %33 = arith.mulf %32, %27 : vector<8x1xf32>
    %34 = arith.mulf %33, %10 : vector<8x1xf32>
    %cst_11 = arith.constant 3.000000e-01 : f32
    %35 = vector.broadcast %cst_11 : f32 to vector<8x1xf32>
    %36 = arith.cmpf ogt, %34, %35 : vector<8x1xf32>
    %cst_12 = arith.constant 5.000000e-01 : f32
    %37 = vector.broadcast %cst_12 : f32 to vector<8x1xf32>
    %38 = arith.subf %0, %37 : vector<8x1xf32>
    %cst_13 = arith.constant 3.000000e-01 : f32
    %39 = vector.broadcast %cst_13 : f32 to vector<8x1xf32>
    %40 = arith.subf %10, %39 : vector<8x1xf32>
    %41 = arith.mulf %38, %40 : vector<8x1xf32>
    %42 = arith.extui %36 : vector<8x1xi1> to vector<8x1xi32>
    %43 = arith.sitofp %42 : vector<8x1xi32> to vector<8x1xf32>
    %44 = arith.mulf %41, %43 : vector<8x1xf32>
    %cst_14 = arith.constant 5.000000e-01 : f32
    %45 = vector.broadcast %cst_14 : f32 to vector<8x1xf32>
    %46 = arith.cmpf olt, %0, %45 : vector<8x1xf32>
    %47 = arith.extui %46 : vector<8x1xi1> to vector<8x1xi32>
    %48 = arith.sitofp %47 : vector<8x1xi32> to vector<8x1xf32>
    %cst_15 = arith.constant 1.000000e+00 : f32
    %49 = vector.broadcast %cst_15 : f32 to vector<8x1xf32>
    %50 = arith.subf %49, %27 : vector<8x1xf32>
    %51 = arith.mulf %48, %50 : vector<8x1xf32>
    %52 = arith.mulf %51, %28 : vector<8x1xf32>
    %cst_16 = arith.constant 3.000000e-01 : f32
    %53 = vector.broadcast %cst_16 : f32 to vector<8x1xf32>
    %54 = arith.cmpf ogt, %52, %53 : vector<8x1xf32>
    %cst_17 = arith.constant 5.000000e-01 : f32
    %55 = vector.broadcast %cst_17 : f32 to vector<8x1xf32>
    %56 = arith.subf %55, %0 : vector<8x1xf32>
    %57 = arith.mulf %56, %28 : vector<8x1xf32>
    %58 = arith.extui %54 : vector<8x1xi1> to vector<8x1xi32>
    %59 = arith.sitofp %58 : vector<8x1xi32> to vector<8x1xf32>
    %60 = arith.mulf %57, %59 : vector<8x1xf32>
    %cst_18 = arith.constant 1.000000e+00 : f32
    %61 = vector.broadcast %cst_18 : f32 to vector<8x1xf32>
    %62 = arith.mulf %61, %44 : vector<8x1xf32>
    %cst_19 = arith.constant 1.000000e+00 : f32
    %63 = vector.broadcast %cst_19 : f32 to vector<8x1xf32>
    %64 = arith.mulf %63, %60 : vector<8x1xf32>
    %65 = arith.addf %62, %64 : vector<8x1xf32>
    %cst_20 = arith.constant dense<0.000000e+00> : vector<1xf32>
    %66 = vector.multi_reduction <add>, %65, %cst_20 [0] : vector<8x1xf32> to vector<1xf32>
    %67 = vector.shape_cast %66 : vector<1xf32> to vector<1x1xf32>
    %c0_21 = arith.constant 0 : index
    %c0_22 = arith.constant 0 : index
    %c0_23 = arith.constant 0 : index
    %68 = vector.load %arg4[%c0_21, %c0_22, %c0_23] : memref<1x1x1xf32, #tpu.memory_space<vmem>>, vector<1x1x1xf32>
    %69 = vector.shape_cast %68 : vector<1x1x1xf32> to vector<1x1xf32>
    %70 = vector.shape_cast %67 : vector<1x1xf32> to vector<1x1x1xf32>
    tpu.vector_store %arg4[%c0_21, %c0_22, %c0_23], %70 {strides = array<i32>} : memref<1x1x1xf32, #tpu.memory_space<vmem>>, vector<1x1x1xf32>,
    return
  }
  func.func @transform_0(%arg0: i32) -> (i32, i32) {
    %c0_i32 = arith.constant 0 : i32
    %c0_i32_0 = arith.constant 0 : i32
    return %arg0, %c0_i32 : i32, i32
  }
  func.func @transform_1(%arg0: i32) -> (i32, i32) {
    %c0_i32 = arith.constant 0 : i32
    %c0_i32_0 = arith.constant 0 : i32
    return %arg0, %c0_i32 : i32, i32
  }
  func.func @transform_2(%arg0: i32) -> (i32, i32) {
    %c0_i32 = arith.constant 0 : i32
    %c0_i32_0 = arith.constant 0 : i32
    return %arg0, %c0_i32 : i32, i32
  }
  func.func @transform_3(%arg0: i32) -> (i32, i32, i32) {
    %c0_i32 = arith.constant 0 : i32
    %c0_i32_0 = arith.constant 0 : i32
    %c0_i32_1 = arith.constant 0 : i32
    return %arg0, %c0_i32, %c0_i32_0 : i32, i32, i32
  }
}

</mosaic_0001>

<bundles_post_ra>
// kernel: tpu_custom_call.1
= control target key start
LH: loop header
LB: loop body
LE: loop exit
PB: predicated region body
PF: predicated region fallthrough
CT: control target
= control target key end

     0   :  { %vm18_vm0 = vcmask 130048   ;;  %s187_s0 = inlined_call_operand.vmem [shape: f32[8,1], index: 0, kind: input, shape index: {}]   ;;  %s188_s1 = inlined_call_operand.vmem [shape: f32[8,16], index: 1, kind: input, shape index: {}]   ;;  %s189_s2 = inlined_call_operand.vmem [shape: s32[8,1], index: 2, kind: input, shape index: {}]   ;;  %s190_s3 = inlined_call_operand.hbm [shape: f32[1,1,1], index: 3, kind: output, shape index: {}]  }
   0x1   :  { %v16_v0 = vld [vmem:[%s188_s1] sm:$0xff] }
   0x2   :  { %v17_v1 = vld [vmem:[%s189_s2] sm:$0xff] }
   0x3   :  { %8 = vsyncpa [#allocation3], 0  ;;  %v19_v2 = vsel %vm18_vm0, %v16_v0, -inf  ;;  %v148_v3 = vmov 0   ;;  %v29_v7 = vlaneseq  ;;  %v15_v25 = vld [vmem:[%s187_s0] sm:$0xff]  ;;  %v149_v30 = vmov 0.0  }
   0x4   :  { %120 = vset.pattern.permute.xlu1 %v148_v3  ;;  %121 = vset.pattern.permute.xlu0 %v148_v3  ;;  %vm61_vm4 = vcmp.gt.f32.partialorder %v15_v25, 0.5  ;;  %vm73_vm5 = vcmp.lt.f32.partialorder %v15_v25, 0.5  ;;  %v112_v38 = vadd.f32 -0.5, %v15_v25  ;;  %v80_v43 = vsub.f32 0.5, %v15_v25  ;;  %s150_s0 = smov [#allocation2]  }
   0x5   :  { %20 = vmax.xlane.f32.xlu0 %v19_v2  ;;  %32 = vperm.xlu1 %120, %v17_v1   ;;  %v30_v8 = vand.u32 127, %v29_v7  ;;  %v111_v31 = vsel %vm61_vm4, 1.0, %v149_v30  ;;  %v115_v35 = vsel %vm73_vm5, 1.0, %v149_v30  ;;  %vm86_vm9 = vcmask 7168   ;;  %s102_s16 = sshll.u32 %s150_s0, 4  ;;  %s103_s16 = int_to_ptr.vmem [resolvable:$true] %s102_s16 }
   0x6   :  { %vm94_vm10 = vcmask 0   ;;  %s126_s17 = scalar_lea.vmem %s103_s16, 16  ;;  %s130_s18 = scalar_lea.vmem %s103_s16, 32 }
   0x7   :  { %p127_p0 = scmp.ne.s32.totalorder %s103_s16, %s126_s17  ;;  %p131_p1 = scmp.lt.s32.totalorder %s103_s16, %s103_s16 }
   0x8   :  { %p132_p2 = scmp.lt.s32.totalorder %s130_s18, %s126_s17 }
   0xa   :  { %p133_p3 = por %p132_p2, %p131_p1 }
   0xc   :  { %p134_p4 = pnand %p133_p3, %p127_p0 }
  0x80   :  { %v33_v9 = vpop.permute.xlu1 %32 }
  0x81   :  { %vm34_vm1 = vcmp.eq.s32.totalorder %v30_v8, %v33_v9 }
  0x8e   :  { %v21_v4 = vpop.xlane.xlu0 %20 }
  0x8f   :  { %v22_v5 = vsub.f32 %v16_v0, %v21_v4 }
  0x91   :  { %v23_v6 = vmul.f32 1.442695, %v22_v5 }
  0x93   :  { %122 = vpow2.f32 %v23_v6 }
  0xa0   :  { %v123_v10 = vpop.eup %122 }
  0xa1   :  { %v25_v11 = vsel %vm18_vm0, %v123_v10, 0.0  ;;  %vm40_vm2 = vcmp.ge.f32.partialorder %v123_v10, 1.0  ;;  %v35_v12 = vsel %vm34_vm1, %v123_v10, 0.0 }
  0xa2   :  { %26 = vadd.xlane.f32.xlu1 %v25_v11  ;;  %v41_v13 = vsel %vm40_vm2, %v30_v8, 16  ;;  %v36_v21 = vsel %vm18_vm0, %v35_v12, 0.0 }
  0xa3   :  { %v42_v14 = vsel %vm18_vm0, %v41_v13, 2147483647 }
  0xa4   :  { %v44_v15 = vshra.s32 %v42_v14, 16  ;;  %v43_v17 = vand.u32 65535, %v42_v14 }
  0xa6   :  { %v46_v16 = vcvt.s32.f32 %v44_v15  ;;  %v45_v19 = vcvt.s32.f32 %v43_v17 }
  0xa8   :  { %47 = vmin.xlane.f32.xlu0 %v46_v16 }
 0x12b   :  { %v27_v22 = vpop.xlane.xlu1 %26 }
 0x12c   :  { %124 = vrcp.f32 %v27_v22 }
 0x131   :  { %v48_v18 = vpop.xlane.xlu0 %47 }
 0x132   :  { %vm49_vm3 = vcmp.eq.f32.partialorder %v46_v16, %v48_v18  ;;  %v54_v23 = vcvt.f32.s32 %v48_v18 }
 0x133   :  { %v50_v20 = vsel %vm49_vm3, %v45_v19, inf }
 0x134   :  { %51 = vmin.xlane.f32.xlu0 %v50_v20  ;;  %v55_v26 = vshll.u32 %v54_v23, 16 }
 0x138   :  { %37 = vadd.xlane.f32.xlu0 %v36_v21 }
 0x139   :  { %v125_v29 = vpop.eup %124 }
 0x13a   :  { %v113_v39 = vadd.f32 -0.3, %v125_v29 }
 0x13c   :  { %v69_v46 = vmul.f32 %v113_v39, %v112_v38 }
 0x1bd   :  { %v52_v24 = vpop.xlane.xlu0 %51 }
 0x1be   :  { %v53_v27 = vcvt.f32.s32 %v52_v24 }
 0x1c0   :  { %v56_v28 = vadd.s32 %v55_v26, %v53_v27 }
 0x1c1   :  { %v38_v32 = vpop.xlane.xlu0 %37 }
 0x1c2   :  { %vm57_vm6 = vcmp.eq.s32.totalorder %v56_v28, %v17_v1  ;;  %v39_v33 = vmul.f32 %v125_v29, %v38_v32 }
 0x1c3   :  { %v110_v34 = vsel %vm57_vm6, 1.0, %v149_v30 }
 0x1c4   :  { %v64_v36 = vmul.f32 %v111_v31, %v110_v34  ;;  %v76_v37 = vsub.f32 1.0, %v110_v34  ;;  %v60_v41 = vsub.f32 %v125_v29, %v39_v33 }
 0x1c6   :  { %v65_v40 = vmul.f32 %v125_v29, %v64_v36  ;;  %v77_v42 = vmul.f32 %v115_v35, %v76_v37  ;;  %v81_v47 = vmul.f32 %v80_v43, %v60_v41 }
 0x1c8   :  { %vm66_vm7 = vcmp.gt.f32.partialorder %v65_v40, 0.3  ;;  %v78_v44 = vmul.f32 %v77_v42, %v60_v41 }
 0x1c9   :  { %v114_v45 = vsel %vm66_vm7, 1.0, %v149_v30 }
 0x1ca   :  { %vm79_vm8 = vcmp.gt.f32.partialorder %v78_v44, 0.3  ;;  %v72_v49 = vmul.f32 %v114_v45, %v69_v46 }
 0x1cb   :  { %v116_v48 = vsel %vm79_vm8, 1.0, %v149_v30 }
 0x1cc   :  { %v84_v50 = vmul.f32 %v116_v48, %v81_v47 }
 0x1ce   :  { %v85_v51 = vadd.f32 %v84_v50, %v72_v49 }
 0x1d0   :  { %v87_v52 = vsel %vm86_vm9, %v85_v51, 0.0 }
 0x1d1   :  { %v88_v53 = vrot.slane %v87_v52, 4 }
 0x1d3   :  { %v89_v54 = vadd.f32 %v88_v53, %v87_v52 }
 0x1d5   :  { %v90_v55 = vrot.slane %v89_v54, 2 }
 0x1d7   :  { %v91_v56 = vadd.f32 %v90_v55, %v89_v54 }
 0x1d9   :  { %v92_v57 = vrot.slane %v91_v56, 1 }
 0x1db   :  { %v93_v58 = vadd.f32 %v92_v57, %v91_v56 }
 0x1dd   :  { %95 = vst.msk [vmem:[#allocation2] sm:$0x1] %vm94_vm10, %v93_v58 }
 0x1de   :  { %137 = shalt.err (!%p134_p4)
}
 0x1df   :  { %105 = dma.vmem_to_hbm [thread:$0]  %s103_s16, 16, %s190_s3, [#allocation3]  }
 0x1e0   :  { %146 = dma.done.wait [#allocation3], 16  }
 0x1e1   :  { %147 = vsyncadd [#allocation3], 4294967280 }
 0x1e2   :  { %109 = vsyncpa [#allocation3], 1 }

</bundles_post_ra>
